<compile_context>
chip_gen: v7x
topology: tpu7x:2x2x1
jax: 0.10.0
libtpu: 0.0.40
codegen_flags: <defaults>
</compile_context>

<pallas_src>
import jax
import jax.numpy as jnp
from jax.experimental import pallas as pl
from jax.experimental.pallas import tpu as pltpu


_LANE = 128                               # vreg lane width
_MAX_COLS = 4096                          # lane-dense width cap (32 vregs wide)
_TILE_BYTE_BUDGET = 8 * 1024 * 1024       # per-block bytes (one buffer)
_VMEM_LIMIT_BYTES = 48 * 1024 * 1024      # covers 4x live blocks + margin; < 64 MiB (v7x)


def _copy_kernel(x_ref, o_ref):
    # Pure pass-through: one VMEM tile in, same tile out.
    o_ref[...] = x_ref[...]


def _sublane(itemsize: int) -> int:
    # f32 -> 8 sublanes, bf16/f16 -> 16, int8/fp8 -> 32.
    return max(8, 32 // max(1, itemsize))


def _pick_layout(total: int, itemsize: int):
    """Pick a lane-dense (rows, cols, tile_rows) 2D layout for `total` elements.

    Returns None when no lane-dense layout exists (caller falls back to
    returning x directly, since forward() is an identity anyway).
    """
    if total <= 0 or total % _LANE != 0:
        return None
    # Grow cols by powers of two up to _MAX_COLS while it still divides total.
    cols = _LANE
    while cols * 2 <= _MAX_COLS and total % (cols * 2) == 0:
        cols *= 2
    rows = total // cols

    sub = _sublane(itemsize)
    # Largest row tile under the byte budget, rounded down to a sublane
    # multiple.  The grid uses pl.cdiv, so a ragged last block is fine and we
    # never fall back to a whole-tensor block that could exceed VMEM.
    max_tr = max(1, _TILE_BYTE_BUDGET // (cols * itemsize))
    tr = min(rows, max_tr)
    if tr >= sub:
        tr = (tr // sub) * sub
    # Prefer >= 2 grid steps when the tensor is big enough, so the "parallel"
    # axis can shard across both TensorCores on v7x (free on v5e/v6e).
    if tr == rows and rows >= 2 * sub:
        half = -(-rows // 2)              # ceil(rows / 2)
        half = -(-half // sub) * sub      # round up to a sublane multiple
        if sub <= half < rows:
            tr = half
    return rows, cols, max(1, tr)


def _pallas_identity_copy(x: jax.Array) -> jax.Array:
    """Debug-only Pallas identity copy of x (lane-dense, tiled, pipelined)."""
    orig_shape = x.shape
    total = x.size
    itemsize = jnp.dtype(x.dtype).itemsize

    layout = _pick_layout(total, itemsize)
    if layout is None:
        # No lane-dense layout (empty tensor or element count not a multiple
        # of 128): forward() is an identity, so just return the input rather
        # than emitting a whole-tensor single block.
        return x

    rows, cols, tr = layout
    x2d = x.reshape(rows, cols)
    grid = (pl.cdiv(rows, tr),)

    out2d = pl.pallas_call(
        _copy_kernel,
        out_shape=jax.ShapeDtypeStruct((rows, cols), x.dtype),
        grid=grid,
        in_specs=[pl.BlockSpec((tr, cols), lambda i: (i, 0))],
        out_specs=pl.BlockSpec((tr, cols), lambda i: (i, 0)),
        cost_estimate=pl.CostEstimate(
            flops=0,
            transcendentals=0,
            bytes_accessed=2 * total * itemsize,
        ),
        compiler_params=pltpu.CompilerParams(
            dimension_semantics=("parallel",),
            vmem_limit_bytes=_VMEM_LIMIT_BYTES,
        ),
    )(x2d)

    return out2d.reshape(orig_shape)


def sam_forward(x: jax.Array, *, use_pallas_copy: bool = False) -> jax.Array:
    """SAM.forward(x): identity.

    Fast path (default) returns x with zero HBM traffic and no kernel launch.
    `use_pallas_copy=True` routes through the Pallas copy kernel for
    verification/debugging only.
    """
    if not use_pallas_copy:
        return x
    return _pallas_identity_copy(x)


# TODO(synk): SAM checkpoint loading, SamPredictor / SamAutomaticMaskGenerator,
# and ResizeLongestSide preprocessing are helper methods, not part of forward();
# they have no clean Pallas equivalent and are intentionally not implemented.


if __name__ == "__main__":
    key = jax.random.PRNGKey(0)
    # NCHW image-like input: batch=2, channels=4, spatial=16x16.
    x = jax.random.normal(key, (2, 4, 16, 16), dtype=jnp.float32)

    # Production path: no kernel launch, pure identity.
    y_fast = sam_forward(x)
    jax.block_until_ready(y_fast)
    assert y_fast.shape == x.shape and y_fast.dtype == x.dtype
    assert bool(jnp.array_equal(y_fast, x)), "identity fast path mismatch"

    # Debug path: exercise the Pallas copy kernel once to confirm it compiles
    # and runs bit-exactly on TPU.
    y_pallas = sam_forward(x, use_pallas_copy=True)
    jax.block_until_ready(y_pallas)
    assert y_pallas.shape == x.shape and y_pallas.dtype == x.dtype
    assert bool(jnp.array_equal(y_pallas, x)), "identity Pallas copy mismatch"

    print("KERNEL_OK")
</pallas_src>

<mosaic_0001>
module attributes {stable_mosaic.version = 11 : i64} {
  func.func @_copy_kernel(%arg0: i32, %arg1: memref<1x2048xf32, #tpu.memory_space<vmem>>, %arg2: memref<1x2048xf32, #tpu.memory_space<vmem>>) attributes {dimension_semantics = [#tpu.dimension_semantics<parallel>], iteration_bounds = array<i64: 1>, scalar_prefetch = 0 : i64, scratch_operands = 0 : i64, tpu.core_type = #tpu.core_type<tc>, window_params = [{transform_indices = @transform_0, window_bounds = array<i64: 1, 2048>}, {transform_indices = @transform_1, window_bounds = array<i64: 1, 2048>}]} {
    %c0 = arith.constant 0 : index
    %c0_0 = arith.constant 0 : index
    %0 = vector.load %arg1[%c0, %c0_0] : memref<1x2048xf32, #tpu.memory_space<vmem>>, vector<1x2048xf32>
    %c0_1 = arith.constant 0 : index
    %c0_2 = arith.constant 0 : index
    %1 = vector.load %arg2[%c0_1, %c0_2] : memref<1x2048xf32, #tpu.memory_space<vmem>>, vector<1x2048xf32>
    tpu.vector_store %arg2[%c0_1, %c0_2], %0 {strides = array<i32>} : memref<1x2048xf32, #tpu.memory_space<vmem>>, vector<1x2048xf32>,
    return
  }
  func.func @transform_0(%arg0: i32) -> (i32, i32) {
    %c0_i32 = arith.constant 0 : i32
    %c0_i32_0 = arith.constant 0 : i32
    return %arg0, %c0_i32 : i32, i32
  }
  func.func @transform_1(%arg0: i32) -> (i32, i32) {
    %c0_i32 = arith.constant 0 : i32
    %c0_i32_0 = arith.constant 0 : i32
    return %arg0, %c0_i32 : i32, i32
  }
}

</mosaic_0001>

<bundles_post_ra>
// kernel: tpu_custom_call.1
= control target key start
LH: loop header
LB: loop body
LE: loop exit
PB: predicated region body
PF: predicated region fallthrough
CT: control target
= control target key end

     0   :  { %6 = vsyncpa [#allocation3], 0  ;;  %s126_s0 = inlined_call_operand.hbm [shape: f32[1,2048], index: 0, kind: input, shape index: {}]   ;;  %s127_s1 = inlined_call_operand.hbm [shape: f32[1,2048], index: 1, kind: output, shape index: {}]  }
   0x1   :  { %7 = vsyncpa [#allocation4], 0  ;;  %s90_s6 = smov [#allocation2]   ;;  %s42_s10 = scalar_lea.hbm %s126_s0, 256 }
   0x2   :  { %s14_s7 = sshll.u32 %s90_s6, 4  ;;  %p43_p0 = scmp.ne.s32.totalorder %s126_s0, %s42_s10  ;;  %s15_s7 = int_to_ptr.vmem [resolvable:$true] %s14_s7 }
   0x3   :  { %p46_p1 = scmp.lt.u32.totalorder %s42_s10, %s126_s0 }
   0x5   :  { %p48_p2 = pnand %p46_p1, %p43_p0 }
   0x7   :  { %51 = shalt.err (!%p48_p2)
}
   0x8   :  { %s52_s15 = scalar_lea.vmem %s15_s7, 256  ;;  %p57_p4 = scmp.lt.s32.totalorder %s15_s7, %s15_s7 }
   0x9   :  { %p53_p3 = scmp.ne.s32.totalorder %s15_s7, %s52_s15  ;;  %p58_p5 = scmp.lt.s32.totalorder %s52_s15, %s52_s15 }
   0xb   :  { %p59_p6 = por %p58_p5, %p57_p4 }
   0xd   :  { %p60_p7 = pnand %p59_p6, %p53_p3 }
   0xf   :  { %63 = shalt.err (!%p60_p7)
}
  0x10   :  { %17 = dma.hbm_to_vmem [thread:$0]  %s126_s0, 256, %s15_s7, [#allocation3]  }
  0x11   :  { %86 = dma.done.wait [#allocation3], 256  }
  0x12   :  { %87 = vsyncadd [#allocation3], 4294967040  ;;  %s91_s18 = smov [#allocation5]   ;;  %v21_v0 = vld [vmem:[#allocation2] sm:$0xff]  ;;  %v22_v1 = vld [vmem:[#allocation2 + $0x8] sm:$0xff] }
  0x13   :  { %s31_s19 = sshll.u32 %s91_s18, 4  ;;  %23 = vst [vmem:[#allocation5] sm:$0xff] %v21_v0  ;;  %24 = vst [vmem:[#allocation5 + $0x8] sm:$0xff] %v22_v1  ;;  %s32_s19 = int_to_ptr.vmem [resolvable:$true] %s31_s19 }
  0x14   :  { %s64_s20 = scalar_lea.vmem %s32_s19, 256  ;;  %p69_p9 = scmp.lt.s32.totalorder %s32_s19, %s32_s19 }
  0x15   :  { %p65_p8 = scmp.ne.s32.totalorder %s32_s19, %s64_s20  ;;  %p70_p10 = scmp.lt.s32.totalorder %s64_s20, %s64_s20 }
  0x17   :  { %p71_p11 = por %p70_p10, %p69_p9 }
  0x19   :  { %p72_p12 = pnand %p71_p11, %p65_p8 }
  0x1b   :  { %75 = shalt.err (!%p72_p12)
}
  0x1c   :  { %s76_s0 = scalar_lea.hbm %s127_s1, 256 }
  0x1d   :  { %p77_p13 = scmp.ne.s32.totalorder %s127_s1, %s76_s0  ;;  %p80_p0 = scmp.lt.u32.totalorder %s76_s0, %s127_s1 }
  0x1f   :  { %p82_p1 = pnand %p80_p0, %p77_p13 }
  0x21   :  { %85 = shalt.err (!%p82_p1)
}
  0x22   :  { %34 = dma.vmem_to_hbm [thread:$0]  %s32_s19, 256, %s127_s1, [#allocation4]  }
  0x23   :  { %88 = dma.done.wait [#allocation4], 256  }
  0x24   :  { %89 = vsyncadd [#allocation4], 4294967040 }
  0x25   :  { %38 = vsyncpa [#allocation3], 1 }
  0x26   :  { %39 = vsyncpa [#allocation4], 1 }

</bundles_post_ra>
